<compile_context>
chip_gen: v6e
topology: v6e:2x2x1
jax: 0.10.0
libtpu: 0.0.40
codegen_flags: <defaults>
</compile_context>

<pallas_src>
import functools

import jax
import jax.numpy as jnp
from jax import lax
from jax.experimental import pallas as pl
from jax.experimental.pallas import tpu as pltpu

LANES = 128


# ----------------------------- config -----------------------------------------
class Config:
    n_embd = 32
    n_head = 4
    ffn_ratio = 4
    norm_eps = 1e-5
    dropout = 0.0


# ----------------------------- helpers -----------------------------------------
def _layernorm(x, gamma, beta, eps):
    # PyTorch nn.LayerNorm: population variance over the last dim.
    mu = jnp.mean(x, axis=-1, keepdims=True)
    var = jnp.mean((x - mu) ** 2, axis=-1, keepdims=True)
    return (x - mu) * lax.rsqrt(var + eps) * gamma + beta


def _round_up(n, m):
    return ((n + m - 1) // m) * m


# ----------------------------- kernel ------------------------------------------
def encoder_layer_kernel(
    x_ref,          # (N, D) token-major activations
    bias_ref,       # (8, slab_w) lane-dense slab of all small vector params
    wqkv_ref,       # (D, 3D) fused qkv weights (q columns pre-scaled by 1/sqrt(Dh))
    wo_ref,         # (D, D)
    wup_ref,        # (D, Dff)
    wdown_ref,      # (Dff, D)
    out_ref,        # (N, D)
    *, batch: int, seq: int, n_head: int, eps: float,
):
    D = wo_ref.shape[0]
    Dff = wdown_ref.shape[0]
    Dh = D // n_head
    N = batch * seq

    # ---- unpack the bias slab (one DMA; static lane slices of a loaded vreg tile) ----
    bias = bias_ref[...]
    ln1_g, ln1_b = bias[0:1, :D], bias[1:2, :D]
    bqkv = bias[2:3, :3 * D]
    bo = bias[3:4, :D]
    ln2_g, ln2_b = bias[4:5, :D], bias[5:6, :D]
    bup = bias[6:7, :Dff]
    bdown = bias[7:8, :D]

    x = x_ref[...]                                               # (N, D)

    # ---- attention branch ----
    xn = _layernorm(x, ln1_g, ln1_b, eps)

    # Fused QKV: one MXU push with N=3D (q columns already carry the 1/sqrt(Dh) scale).
    qkv = jnp.dot(xn, wqkv_ref[...], preferred_element_type=jnp.float32) + bqkv  # (N, 3D)

    # Build (H*B, S, Dh) q/k/v (head-major batch ordering, consistent across q/k/v/o):
    # static width-Dh lane slices + leading-dim split reshape + leading-axis concat.
    def split_heads(off):
        parts = [qkv[:, off + h * Dh: off + (h + 1) * Dh].reshape(batch, seq, Dh)
                 for h in range(n_head)]
        return jnp.concatenate(parts, axis=0)                    # (H*B, S, Dh)

    q = split_heads(0)
    k = split_heads(D)
    v = split_heads(2 * D)

    # One batched einsum pair over B*H (review item 2).  A possible vxpose of k here is an
    # 8x8 XLU transpose in an otherwise idle slot -> accepted.
    s = jnp.einsum("bqd,bkd->bqk", q, k, preferred_element_type=jnp.float32)   # (HB, S, S)
    # TODO(synk): padding_mask (optional BoolTensor) not implemented; wrapper asserts None.
    m = jnp.max(s, axis=-1, keepdims=True)
    p = jnp.exp(s - m)                                           # unnormalized probs
    l = jnp.sum(p, axis=-1, keepdims=True)
    o = jnp.einsum("bqk,bkd->bqd", p, v, preferred_element_type=jnp.float32)   # (HB, S, Dh)
    o = o / l                                                    # exact softmax normalization

    # Merge heads back to (N, D) with a lane concat, then ONE K=D output projection.
    o2d = jnp.concatenate(
        [o[h * batch:(h + 1) * batch].reshape(N, Dh) for h in range(n_head)], axis=-1)
    attn = jnp.dot(o2d, wo_ref[...], preferred_element_type=jnp.float32) + bo

    x1 = x + attn                                   # residual (dropout = identity, eval mode)

    # ---- ffn branch (SiLU) ----
    xn2 = _layernorm(x1, ln2_g, ln2_b, eps)
    up = jnp.dot(xn2, wup_ref[...], preferred_element_type=jnp.float32) + bup
    up = up * jax.nn.sigmoid(up)                    # SiLU
    down = jnp.dot(up, wdown_ref[...], preferred_element_type=jnp.float32) + bdown

    out_ref[...] = (x1 + down).astype(out_ref.dtype)


# ----------------------------- wrapper ------------------------------------------
def encoder_layer(x, params, cfg: Config, padding_mask=None):
    """x: (B, S, D) float32."""
    assert padding_mask is None, "padding_mask is not supported by this kernel"
    B, S, D = x.shape
    assert D == cfg.n_embd
    H = cfg.n_head
    Dh = D // H
    Dff = D * cfg.ffn_ratio
    N = B * S
    scale = 1.0 / (Dh ** 0.5)

    # Fold the attention scale into the Q projection (weights AND bias) - free in the wrapper.
    wqkv = jnp.concatenate([params["wq"] * scale, params["wk"], params["wv"]], axis=1)  # (D,3D)
    bqkv = jnp.concatenate([params["bq"] * scale, params["bk"], params["bv"]], axis=1)  # (1,3D)

    # Collapse all small vector params into ONE lane-dense (8, slab_w) slab -> single DMA.
    slab_w = max(LANES, _round_up(max(3 * D, Dff, D), LANES))

    def row(v):
        return jnp.pad(v, ((0, 0), (0, slab_w - v.shape[1])))

    bias_slab = jnp.concatenate([
        row(params["ln1_g"]), row(params["ln1_b"]),   # rows 0, 1
        row(bqkv),                                    # row 2
        row(params["bo"]),                            # row 3
        row(params["ln2_g"]), row(params["ln2_b"]),   # rows 4, 5
        row(params["bup"]),                           # row 6
        row(params["bdown"]),                         # row 7
    ], axis=0)                                        # (8, slab_w)

    x2 = x.reshape(N, D)

    def full(shape):
        return pl.BlockSpec(shape, lambda i: (0,) * len(shape))

    in_specs = [
        full((N, D)),             # x (token-major)
        full((8, slab_w)),        # bias slab (single lane-dense DMA)
        full((D, 3 * D)),         # fused wqkv
        full((D, D)),             # wo
        full((D, Dff)),           # wup
        full((Dff, D)),           # wdown
    ]

    kernel = functools.partial(
        encoder_layer_kernel, batch=B, seq=S, n_head=H, eps=cfg.norm_eps)

    flops = (2 * N * D * 3 * D            # fused qkv projection
             + 4 * B * H * S * S * Dh     # scores + PV
             + 2 * N * D * D              # output projection
             + 4 * N * D * Dff)           # ffn up + down
    transcendentals = B * H * S * S + N * Dff + 2 * N
    bytes_accessed = 4 * (2 * N * D + 3 * D * D + D * D + 2 * D * Dff + 8 * slab_w)

    out = pl.pallas_call(
        kernel,
        out_shape=jax.ShapeDtypeStruct((N, D), x.dtype),
        grid=(1,),                                     # single invocation: whole problem resident
        in_specs=in_specs,
        out_specs=full((N, D)),
        compiler_params=pltpu.CompilerParams(
            # single step -> "arbitrary"; at scaled-up B*S, add a leading row-tile axis marked
            # "parallel" (feeds v7x's 2nd TensorCore) and set vmem_limit_bytes for 64 MiB VMEM.
            dimension_semantics=("arbitrary",)),
        cost_estimate=pl.CostEstimate(
            flops=flops, transcendentals=transcendentals, bytes_accessed=bytes_accessed),
    )(
        x2, bias_slab, wqkv,
        params["wo"], params["wup"], params["wdown"],
    )

    return out.reshape(B, S, D)


# ----------------------------- params ------------------------------------------
def init_params(key, cfg: Config):
    D = cfg.n_embd
    Dff = D * cfg.ffn_ratio
    keys = jax.random.split(key, 12)

    def lin(k, fan_in, fan_out):
        # weight stored as (in, out) == PyTorch weight.T
        w = jax.random.normal(k, (fan_in, fan_out), jnp.float32) * 0.02
        b = jnp.zeros((1, fan_out), jnp.float32)
        return w, b

    wq, bq = lin(keys[0], D, D)
    wk, bk = lin(keys[1], D, D)
    wv, bv = lin(keys[2], D, D)
    wo, bo = lin(keys[3], D, D)
    wup, bup = lin(keys[4], D, Dff)
    wdown, bdown = lin(keys[5], Dff, D)
    bq = jax.random.normal(keys[6], (1, D), jnp.float32) * 0.01
    bo = jax.random.normal(keys[7], (1, D), jnp.float32) * 0.01
    bup = jax.random.normal(keys[8], (1, Dff), jnp.float32) * 0.01
    bdown = jax.random.normal(keys[9], (1, D), jnp.float32) * 0.01

    return dict(
        ln1_g=jnp.ones((1, D), jnp.float32), ln1_b=jnp.zeros((1, D), jnp.float32),
        wq=wq, bq=bq, wk=wk, bk=bk, wv=wv, bv=bv, wo=wo, bo=bo,
        ln2_g=jnp.ones((1, D), jnp.float32), ln2_b=jnp.zeros((1, D), jnp.float32),
        wup=wup, bup=bup, wdown=wdown, bdown=bdown,
    )


# ----------------------------- reference (plain JAX) -----------------------------
def encoder_layer_ref(x, p, cfg: Config):
    D = cfg.n_embd
    H = cfg.n_head
    Dh = D // H
    eps = cfg.norm_eps

    def ln(x, g, b):
        mu = jnp.mean(x, -1, keepdims=True)
        var = jnp.mean((x - mu) ** 2, -1, keepdims=True)
        return (x - mu) / jnp.sqrt(var + eps) * g + b

    xn = ln(x, p["ln1_g"][0], p["ln1_b"][0])
    q = xn @ p["wq"] + p["bq"][0]
    k = xn @ p["wk"] + p["bk"][0]
    v = xn @ p["wv"] + p["bv"][0]
    B, S, _ = x.shape
    q = q.reshape(B, S, H, Dh).transpose(0, 2, 1, 3)
    k = k.reshape(B, S, H, Dh).transpose(0, 2, 1, 3)
    v = v.reshape(B, S, H, Dh).transpose(0, 2, 1, 3)
    s = jnp.einsum("bhqd,bhkd->bhqk", q, k) / (Dh ** 0.5)
    a = jax.nn.softmax(s, axis=-1)
    o = jnp.einsum("bhqk,bhkd->bhqd", a, v).transpose(0, 2, 1, 3).reshape(B, S, D)
    o = o @ p["wo"] + p["bo"][0]
    x1 = x + o
    xn2 = ln(x1, p["ln2_g"][0], p["ln2_b"][0])
    up = xn2 @ p["wup"] + p["bup"][0]
    up = up * jax.nn.sigmoid(up)
    down = up @ p["wdown"] + p["bdown"][0]
    return x1 + down


# ----------------------------- main ----------------------------------------------
if __name__ == "__main__":
    cfg = Config()
    B, S, D = 2, 8, cfg.n_embd

    key = jax.random.PRNGKey(0)
    k_x, k_p = jax.random.split(key)
    x = jax.random.normal(k_x, (B, S, D), jnp.float32)
    params = init_params(k_p, cfg)

    out = jax.block_until_ready(encoder_layer(x, params, cfg))
    ref = encoder_layer_ref(x, params, cfg)

    assert out.shape == (B, S, D)
    max_err = float(jnp.max(jnp.abs(out - ref)))
    # approx-reciprocal removed; tolerance only covers MXU default-precision f32 (bf16-pass)
    # rounding differences between the Mosaic kernel and the XLA reference.
    assert jnp.allclose(out, ref, atol=5e-4, rtol=5e-4), max_err

    print("KERNEL_OK")
</pallas_src>

<mosaic_0001>
module attributes {stable_mosaic.version = 11 : i64} {
  func.func @encoder_layer_kernel(%arg0: i32, %arg1: memref<16x32xf32, #tpu.memory_space<vmem>>, %arg2: memref<8x128xf32, #tpu.memory_space<vmem>>, %arg3: memref<32x96xf32, #tpu.memory_space<vmem>>, %arg4: memref<32x32xf32, #tpu.memory_space<vmem>>, %arg5: memref<32x128xf32, #tpu.memory_space<vmem>>, %arg6: memref<128x32xf32, #tpu.memory_space<vmem>>, %arg7: memref<16x32xf32, #tpu.memory_space<vmem>>) attributes {dimension_semantics = [#tpu.dimension_semantics<arbitrary>], iteration_bounds = array<i64: 1>, scalar_prefetch = 0 : i64, scratch_operands = 0 : i64, tpu.core_type = #tpu.core_type<tc>, window_params = [{pipeline_mode = #tpu.pipeline_mode<synchronous>, transform_indices = @transform_0, window_bounds = array<i64: 16, 32>}, {pipeline_mode = #tpu.pipeline_mode<synchronous>, transform_indices = @transform_1, window_bounds = array<i64: 8, 128>}, {pipeline_mode = #tpu.pipeline_mode<synchronous>, transform_indices = @transform_2, window_bounds = array<i64: 32, 96>}, {pipeline_mode = #tpu.pipeline_mode<synchronous>, transform_indices = @transform_3, window_bounds = array<i64: 32, 32>}, {pipeline_mode = #tpu.pipeline_mode<synchronous>, transform_indices = @transform_4, window_bounds = array<i64: 32, 128>}, {pipeline_mode = #tpu.pipeline_mode<synchronous>, transform_indices = @transform_5, window_bounds = array<i64: 128, 32>}, {pipeline_mode = #tpu.pipeline_mode<synchronous>, transform_indices = @transform_6, window_bounds = array<i64: 16, 32>}]} {
    %c0 = arith.constant 0 : index
    %c0_0 = arith.constant 0 : index
    %0 = vector.load %arg2[%c0, %c0_0] : memref<8x128xf32, #tpu.memory_space<vmem>>, vector<8x128xf32>
    %1 = vector.extract_strided_slice %0 {offsets = [0, 0], sizes = [1, 32], strides = [1, 1]} : vector<8x128xf32> to vector<1x32xf32>
    %2 = vector.extract_strided_slice %0 {offsets = [1, 0], sizes = [1, 32], strides = [1, 1]} : vector<8x128xf32> to vector<1x32xf32>
    %3 = vector.extract_strided_slice %0 {offsets = [2, 0], sizes = [1, 96], strides = [1, 1]} : vector<8x128xf32> to vector<1x96xf32>
    %4 = vector.extract_strided_slice %0 {offsets = [3, 0], sizes = [1, 32], strides = [1, 1]} : vector<8x128xf32> to vector<1x32xf32>
    %5 = vector.extract_strided_slice %0 {offsets = [4, 0], sizes = [1, 32], strides = [1, 1]} : vector<8x128xf32> to vector<1x32xf32>
    %6 = vector.extract_strided_slice %0 {offsets = [5, 0], sizes = [1, 32], strides = [1, 1]} : vector<8x128xf32> to vector<1x32xf32>
    %7 = vector.extract_strided_slice %0 {offsets = [6, 0], sizes = [1, 128], strides = [1, 1]} : vector<8x128xf32> to vector<1x128xf32>
    %8 = vector.extract_strided_slice %0 {offsets = [7, 0], sizes = [1, 32], strides = [1, 1]} : vector<8x128xf32> to vector<1x32xf32>
    %c0_1 = arith.constant 0 : index
    %c0_2 = arith.constant 0 : index
    %9 = vector.load %arg1[%c0_1, %c0_2] : memref<16x32xf32, #tpu.memory_space<vmem>>, vector<16x32xf32>
    %cst = arith.constant dense<0.000000e+00> : vector<16xf32>
    %10 = vector.multi_reduction <add>, %9, %cst [1] : vector<16x32xf32> to vector<16xf32>
    %11 = vector.shape_cast %10 : vector<16xf32> to vector<16x1xf32>
    %cst_3 = arith.constant 3.200000e+01 : f32
    %12 = vector.broadcast %cst_3 : f32 to vector<16x1xf32>
    %13 = arith.divf %11, %12 : vector<16x1xf32>
    %14 = vector.broadcast %13 : vector<16x1xf32> to vector<16x32xf32>
    %15 = arith.subf %9, %14 : vector<16x32xf32>
    %16 = arith.mulf %15, %15 : vector<16x32xf32>
    %cst_4 = arith.constant dense<0.000000e+00> : vector<16xf32>
    %17 = vector.multi_reduction <add>, %16, %cst_4 [1] : vector<16x32xf32> to vector<16xf32>
    %18 = vector.shape_cast %17 : vector<16xf32> to vector<16x1xf32>
    %cst_5 = arith.constant 3.200000e+01 : f32
    %19 = vector.broadcast %cst_5 : f32 to vector<16x1xf32>
    %20 = arith.divf %18, %19 : vector<16x1xf32>
    %21 = vector.broadcast %13 : vector<16x1xf32> to vector<16x32xf32>
    %22 = arith.subf %9, %21 : vector<16x32xf32>
    %cst_6 = arith.constant 9.99999974E-6 : f32
    %23 = vector.broadcast %cst_6 : f32 to vector<16x1xf32>
    %24 = arith.addf %20, %23 : vector<16x1xf32>
    %25 = math.rsqrt %24 : vector<16x1xf32>
    %26 = vector.broadcast %25 : vector<16x1xf32> to vector<16x32xf32>
    %27 = arith.mulf %22, %26 : vector<16x32xf32>
    %28 = vector.broadcast %1 : vector<1x32xf32> to vector<16x32xf32>
    %29 = arith.mulf %27, %28 : vector<16x32xf32>
    %30 = vector.broadcast %2 : vector<1x32xf32> to vector<16x32xf32>
    %31 = arith.addf %29, %30 : vector<16x32xf32>
    %c0_7 = arith.constant 0 : index
    %c0_8 = arith.constant 0 : index
    %32 = vector.load %arg3[%c0_7, %c0_8] : memref<32x96xf32, #tpu.memory_space<vmem>>, vector<32x96xf32>
    %cst_9 = arith.constant dense<0.000000e+00> : vector<16x96xf32>
    %33 = tpu.matmul %31, %32, %cst_9 {dimension_numbers = #tpu.dot_dimension_numbers<[1], [0], [0], [1], [0, 0, 1, 1], [], []>} : vector<16x32xf32>, vector<32x96xf32>, vector<16x96xf32> -> vector<16x96xf32>
    %34 = vector.broadcast %3 : vector<1x96xf32> to vector<16x96xf32>
    %35 = arith.addf %33, %34 : vector<16x96xf32>
    %36 = vector.extract_strided_slice %35 {offsets = [0, 0], sizes = [16, 8], strides = [1, 1]} : vector<16x96xf32> to vector<16x8xf32>
    %37 = vector.shape_cast %36 : vector<16x8xf32> to vector<2x8x8xf32>
    %38 = vector.extract_strided_slice %35 {offsets = [0, 8], sizes = [16, 8], strides = [1, 1]} : vector<16x96xf32> to vector<16x8xf32>
    %39 = vector.shape_cast %38 : vector<16x8xf32> to vector<2x8x8xf32>
    %40 = vector.extract_strided_slice %35 {offsets = [0, 16], sizes = [16, 8], strides = [1, 1]} : vector<16x96xf32> to vector<16x8xf32>
    %41 = vector.shape_cast %40 : vector<16x8xf32> to vector<2x8x8xf32>
    %42 = vector.extract_strided_slice %35 {offsets = [0, 24], sizes = [16, 8], strides = [1, 1]} : vector<16x96xf32> to vector<16x8xf32>
    %43 = vector.shape_cast %42 : vector<16x8xf32> to vector<2x8x8xf32>
    %44 = tpu.concatenate %37, %39, %41, %43 in 0 : vector<2x8x8xf32>, vector<2x8x8xf32>, vector<2x8x8xf32>, vector<2x8x8xf32> -> vector<8x8x8xf32>
    %45 = vector.extract_strided_slice %35 {offsets = [0, 32], sizes = [16, 8], strides = [1, 1]} : vector<16x96xf32> to vector<16x8xf32>
    %46 = vector.shape_cast %45 : vector<16x8xf32> to vector<2x8x8xf32>
    %47 = vector.extract_strided_slice %35 {offsets = [0, 40], sizes = [16, 8], strides = [1, 1]} : vector<16x96xf32> to vector<16x8xf32>
    %48 = vector.shape_cast %47 : vector<16x8xf32> to vector<2x8x8xf32>
    %49 = vector.extract_strided_slice %35 {offsets = [0, 48], sizes = [16, 8], strides = [1, 1]} : vector<16x96xf32> to vector<16x8xf32>
    %50 = vector.shape_cast %49 : vector<16x8xf32> to vector<2x8x8xf32>
    %51 = vector.extract_strided_slice %35 {offsets = [0, 56], sizes = [16, 8], strides = [1, 1]} : vector<16x96xf32> to vector<16x8xf32>
    %52 = vector.shape_cast %51 : vector<16x8xf32> to vector<2x8x8xf32>
    %53 = tpu.concatenate %46, %48, %50, %52 in 0 : vector<2x8x8xf32>, vector<2x8x8xf32>, vector<2x8x8xf32>, vector<2x8x8xf32> -> vector<8x8x8xf32>
    %54 = vector.extract_strided_slice %35 {offsets = [0, 64], sizes = [16, 8], strides = [1, 1]} : vector<16x96xf32> to vector<16x8xf32>
    %55 = vector.shape_cast %54 : vector<16x8xf32> to vector<2x8x8xf32>
    %56 = vector.extract_strided_slice %35 {offsets = [0, 72], sizes = [16, 8], strides = [1, 1]} : vector<16x96xf32> to vector<16x8xf32>
    %57 = vector.shape_cast %56 : vector<16x8xf32> to vector<2x8x8xf32>
    %58 = vector.extract_strided_slice %35 {offsets = [0, 80], sizes = [16, 8], strides = [1, 1]} : vector<16x96xf32> to vector<16x8xf32>
    %59 = vector.shape_cast %58 : vector<16x8xf32> to vector<2x8x8xf32>
    %60 = vector.extract_strided_slice %35 {offsets = [0, 88], sizes = [16, 8], strides = [1, 1]} : vector<16x96xf32> to vector<16x8xf32>
    %61 = vector.shape_cast %60 : vector<16x8xf32> to vector<2x8x8xf32>
    %62 = tpu.concatenate %55, %57, %59, %61 in 0 : vector<2x8x8xf32>, vector<2x8x8xf32>, vector<2x8x8xf32>, vector<2x8x8xf32> -> vector<8x8x8xf32>
    "tpu.trace_start"() <{level = 10 : i32, message = "bqd,bkd->bqk"}> : () -> ()
    %cst_10 = arith.constant dense<0.000000e+00> : vector<8x8x8xf32>
    %63 = tpu.matmul %44, %53, %cst_10 {dimension_numbers = #tpu.dot_dimension_numbers<[2], [2], [1], [1], [0, 0, 0, 1, 1, 1], [0], [0]>} : vector<8x8x8xf32>, vector<8x8x8xf32>, vector<8x8x8xf32> -> vector<8x8x8xf32>
    "tpu.trace_stop"() : () -> ()
    %cst_11 = arith.constant dense<0xFF800000> : vector<8x8xf32>
    %64 = vector.multi_reduction <maximumf>, %63, %cst_11 [2] : vector<8x8x8xf32> to vector<8x8xf32>
    %65 = vector.shape_cast %64 : vector<8x8xf32> to vector<8x8x1xf32>
    %66 = vector.broadcast %65 : vector<8x8x1xf32> to vector<8x8x8xf32>
    %67 = arith.subf %63, %66 : vector<8x8x8xf32>
    %68 = math.exp %67 : vector<8x8x8xf32>
    %cst_12 = arith.constant dense<0.000000e+00> : vector<8x8xf32>
    %69 = vector.multi_reduction <add>, %68, %cst_12 [2] : vector<8x8x8xf32> to vector<8x8xf32>
    %70 = vector.shape_cast %69 : vector<8x8xf32> to vector<8x8x1xf32>
    "tpu.trace_start"() <{level = 10 : i32, message = "bqk,bkd->bqd"}> : () -> ()
    %cst_13 = arith.constant dense<0.000000e+00> : vector<8x8x8xf32>
    %71 = tpu.matmul %68, %62, %cst_13 {dimension_numbers = #tpu.dot_dimension_numbers<[2], [1], [1], [2], [0, 0, 0, 1, 1, 2], [0], [0]>} : vector<8x8x8xf32>, vector<8x8x8xf32>, vector<8x8x8xf32> -> vector<8x8x8xf32>
    "tpu.trace_stop"() : () -> ()
    %72 = vector.broadcast %70 : vector<8x8x1xf32> to vector<8x8x8xf32>
    %73 = arith.divf %71, %72 : vector<8x8x8xf32>
    %74 = vector.extract_strided_slice %73 {offsets = [0, 0, 0], sizes = [2, 8, 8], strides = [1, 1, 1]} : vector<8x8x8xf32> to vector<2x8x8xf32>
    %75 = vector.shape_cast %74 : vector<2x8x8xf32> to vector<16x8xf32>
    %76 = vector.extract_strided_slice %73 {offsets = [2, 0, 0], sizes = [2, 8, 8], strides = [1, 1, 1]} : vector<8x8x8xf32> to vector<2x8x8xf32>
    %77 = vector.shape_cast %76 : vector<2x8x8xf32> to vector<16x8xf32>
    %78 = vector.extract_strided_slice %73 {offsets = [4, 0, 0], sizes = [2, 8, 8], strides = [1, 1, 1]} : vector<8x8x8xf32> to vector<2x8x8xf32>
    %79 = vector.shape_cast %78 : vector<2x8x8xf32> to vector<16x8xf32>
    %80 = vector.extract_strided_slice %73 {offsets = [6, 0, 0], sizes = [2, 8, 8], strides = [1, 1, 1]} : vector<8x8x8xf32> to vector<2x8x8xf32>
    %81 = vector.shape_cast %80 : vector<2x8x8xf32> to vector<16x8xf32>
    %82 = tpu.concatenate %75, %77, %79, %81 in 1 : vector<16x8xf32>, vector<16x8xf32>, vector<16x8xf32>, vector<16x8xf32> -> vector<16x32xf32>
    %c0_14 = arith.constant 0 : index
    %c0_15 = arith.constant 0 : index
    %83 = vector.load %arg4[%c0_14, %c0_15] : memref<32x32xf32, #tpu.memory_space<vmem>>, vector<32x32xf32>
    %cst_16 = arith.constant dense<0.000000e+00> : vector<16x32xf32>
    %84 = tpu.matmul %82, %83, %cst_16 {dimension_numbers = #tpu.dot_dimension_numbers<[1], [0], [0], [1], [0, 0, 1, 1], [], []>} : vector<16x32xf32>, vector<32x32xf32>, vector<16x32xf32> -> vector<16x32xf32>
    %85 = vector.broadcast %4 : vector<1x32xf32> to vector<16x32xf32>
    %86 = arith.addf %84, %85 : vector<16x32xf32>
    %87 = arith.addf %9, %86 : vector<16x32xf32>
    %cst_17 = arith.constant dense<0.000000e+00> : vector<16xf32>
    %88 = vector.multi_reduction <add>, %87, %cst_17 [1] : vector<16x32xf32> to vector<16xf32>
    %89 = vector.shape_cast %88 : vector<16xf32> to vector<16x1xf32>
    %cst_18 = arith.constant 3.200000e+01 : f32
    %90 = vector.broadcast %cst_18 : f32 to vector<16x1xf32>
    %91 = arith.divf %89, %90 : vector<16x1xf32>
    %92 = vector.broadcast %91 : vector<16x1xf32> to vector<16x32xf32>
    %93 = arith.subf %87, %92 : vector<16x32xf32>
    %94 = arith.mulf %93, %93 : vector<16x32xf32>
    %cst_19 = arith.constant dense<0.000000e+00> : vector<16xf32>
    %95 = vector.multi_reduction <add>, %94, %cst_19 [1] : vector<16x32xf32> to vector<16xf32>
    %96 = vector.shape_cast %95 : vector<16xf32> to vector<16x1xf32>
    %cst_20 = arith.constant 3.200000e+01 : f32
    %97 = vector.broadcast %cst_20 : f32 to vector<16x1xf32>
    %98 = arith.divf %96, %97 : vector<16x1xf32>
    %99 = vector.broadcast %91 : vector<16x1xf32> to vector<16x32xf32>
    %100 = arith.subf %87, %99 : vector<16x32xf32>
    %cst_21 = arith.constant 9.99999974E-6 : f32
    %101 = vector.broadcast %cst_21 : f32 to vector<16x1xf32>
    %102 = arith.addf %98, %101 : vector<16x1xf32>
    %103 = math.rsqrt %102 : vector<16x1xf32>
    %104 = vector.broadcast %103 : vector<16x1xf32> to vector<16x32xf32>
    %105 = arith.mulf %100, %104 : vector<16x32xf32>
    %106 = vector.broadcast %5 : vector<1x32xf32> to vector<16x32xf32>
    %107 = arith.mulf %105, %106 : vector<16x32xf32>
    %108 = vector.broadcast %6 : vector<1x32xf32> to vector<16x32xf32>
    %109 = arith.addf %107, %108 : vector<16x32xf32>
    %c0_22 = arith.constant 0 : index
    %c0_23 = arith.constant 0 : index
    %110 = vector.load %arg5[%c0_22, %c0_23] : memref<32x128xf32, #tpu.memory_space<vmem>>, vector<32x128xf32>
    %cst_24 = arith.constant dense<0.000000e+00> : vector<16x128xf32>
    %111 = tpu.matmul %109, %110, %cst_24 {dimension_numbers = #tpu.dot_dimension_numbers<[1], [0], [0], [1], [0, 0, 1, 1], [], []>} : vector<16x32xf32>, vector<32x128xf32>, vector<16x128xf32> -> vector<16x128xf32>
    %112 = vector.broadcast %7 : vector<1x128xf32> to vector<16x128xf32>
    %113 = arith.addf %111, %112 : vector<16x128xf32>
    %114 = arith.negf %113 : vector<16x128xf32>
    %115 = math.exp %114 : vector<16x128xf32>
    %cst_25 = arith.constant 1.000000e+00 : f32
    %116 = vector.broadcast %cst_25 : f32 to vector<16x128xf32>
    %117 = arith.addf %116, %115 : vector<16x128xf32>
    %118 = arith.divf %116, %117 : vector<16x128xf32>
    %119 = arith.mulf %113, %118 : vector<16x128xf32>
    %c0_26 = arith.constant 0 : index
    %c0_27 = arith.constant 0 : index
    %120 = vector.load %arg6[%c0_26, %c0_27] : memref<128x32xf32, #tpu.memory_space<vmem>>, vector<128x32xf32>
    %cst_28 = arith.constant dense<0.000000e+00> : vector<16x32xf32>
    %121 = tpu.matmul %119, %120, %cst_28 {dimension_numbers = #tpu.dot_dimension_numbers<[1], [0], [0], [1], [0, 0, 1, 1], [], []>} : vector<16x128xf32>, vector<128x32xf32>, vector<16x32xf32> -> vector<16x32xf32>
    %122 = vector.broadcast %8 : vector<1x32xf32> to vector<16x32xf32>
    %123 = arith.addf %121, %122 : vector<16x32xf32>
    %124 = arith.addf %87, %123 : vector<16x32xf32>
    %c0_29 = arith.constant 0 : index
    %c0_30 = arith.constant 0 : index
    %125 = vector.load %arg7[%c0_29, %c0_30] : memref<16x32xf32, #tpu.memory_space<vmem>>, vector<16x32xf32>
    tpu.vector_store %arg7[%c0_29, %c0_30], %124 {strides = array<i32>} : memref<16x32xf32, #tpu.memory_space<vmem>>, vector<16x32xf32>,
    return
  }
  func.func @transform_0(%arg0: i32) -> (i32, i32) {
    %c0_i32 = arith.constant 0 : i32
    %c0_i32_0 = arith.constant 0 : i32
    %c0_i32_1 = arith.constant 0 : i32
    return %c0_i32, %c0_i32_0 : i32, i32
  }
  func.func @transform_1(%arg0: i32) -> (i32, i32) {
    %c0_i32 = arith.constant 0 : i32
    %c0_i32_0 = arith.constant 0 : i32
    %c0_i32_1 = arith.constant 0 : i32
    return %c0_i32, %c0_i32_0 : i32, i32
  }
  func.func @transform_2(%arg0: i32) -> (i32, i32) {
    %c0_i32 = arith.constant 0 : i32
    %c0_i32_0 = arith.constant 0 : i32
    %c0_i32_1 = arith.constant 0 : i32
    return %c0_i32, %c0_i32_0 : i32, i32
  }
  func.func @transform_3(%arg0: i32) -> (i32, i32) {
    %c0_i32 = arith.constant 0 : i32
    %c0_i32_0 = arith.constant 0 : i32
    %c0_i32_1 = arith.constant 0 : i32
    return %c0_i32, %c0_i32_0 : i32, i32
  }
  func.func @transform_4(%arg0: i32) -> (i32, i32) {
    %c0_i32 = arith.constant 0 : i32
    %c0_i32_0 = arith.constant 0 : i32
    %c0_i32_1 = arith.constant 0 : i32
    return %c0_i32, %c0_i32_0 : i32, i32
  }
  func.func @transform_5(%arg0: i32) -> (i32, i32) {
    %c0_i32 = arith.constant 0 : i32
    %c0_i32_0 = arith.constant 0 : i32
    %c0_i32_1 = arith.constant 0 : i32
    return %c0_i32, %c0_i32_0 : i32, i32
  }
  func.func @transform_6(%arg0: i32) -> (i32, i32) {
    %c0_i32 = arith.constant 0 : i32
    %c0_i32_0 = arith.constant 0 : i32
    %c0_i32_1 = arith.constant 0 : i32
    return %c0_i32, %c0_i32_0 : i32, i32
  }
}

</mosaic_0001>

<bundles_post_ra>
// kernel: tpu_custom_call.1
= control target key start
LH: loop header
LB: loop body
LE: loop exit
PB: predicated region body
PF: predicated region fallthrough
CT: control target
= control target key end

     0   :  { %vm27_vm0 = vcmask 261120   ;;  %s2508_s0 = inlined_call_operand.vmem [shape: f32[16,32], index: 0, kind: input, shape index: {}]   ;;  %s2509_s1 = inlined_call_operand.vmem [shape: f32[8,128], index: 1, kind: input, shape index: {}]   ;;  %s2510_s2 = inlined_call_operand.vmem [shape: f32[32,96], index: 2, kind: input, shape index: {}]   ;;  %s2511_s3 = inlined_call_operand.vmem [shape: f32[32,32], index: 3, kind: input, shape index: {}]   ;;  %s2512_s4 = inlined_call_operand.vmem [shape: f32[32,128], index: 4, kind: input, shape index: {}]   ;;  %s2513_s5 = inlined_call_operand.vmem [shape: f32[128,32], index: 5, kind: input, shape index: {}]   ;;  %s2514_s6 = inlined_call_operand.hbm [shape: f32[16,32], index: 6, kind: output, shape index: {}]  }
   0x1   :  { %v2234_v0 = vld [vmem:[%s2508_s0] sm:$0xff]  ;;  %v2239_v1 = vld [vmem:[%s2508_s0 + $0x8] sm:$0xff] }
   0x2   :  { %11 = vsyncpa [#allocation3], 0  ;;  %v28_v2 = vsel %vm27_vm0, %v2234_v0, 0.0  ;;  %v31_v3 = vsel %vm27_vm0, %v2239_v1, 0.0  ;;  %v70_v14 = vld [vmem:[%s2510_s2 + $0x18] sm:$0xff]  ;;  %v69_v15 = vld [vmem:[%s2510_s2 + $0x10] sm:$0xff]  ;;  %v55_v23 = vlaneseq }
   0x3   :  { %29 = vadd.xlane.f32.xlu0 %v28_v2  ;;  %1954 = vmatprep.subr.mxu1 %v70_v14  ;;  %v68_v16 = vld [vmem:[%s2510_s2 + $0x8] sm:$0xff]  ;;  %v67_v17 = vld [vmem:[%s2510_s2] sm:$0xff]  ;;  %v2184_v41 = vmov 0.0   ;;  %vm2185_vm1 = vmmov 0   ;;  %s2187_s2 = smov 112   ;;  %s2188_s10 = smov 104  }
   0x4   :  { %1955 = vmatpush3.msra.mxu1 %v70_v14  ;;  %v2261_v25 = vshrl.u32 %v55_v23, 7  ;;  %v2267_v27 = vld [vmem:[%s2509_s1] sm:$0xff]  ;;  %1975 = vmatprep.subr.mxu0 %v2184_v41  ;;  %s2186_s1 = smov 120   ;;  %s2189_s11 = smov 96   ;;  %vm172_vm2 = vcmask 64512   ;;  %vm1504_vm3 = vcmask 195584  }
   0x5   :  { %1956 = vmatprep.subr.mxu1 %v69_v15  ;;  %1977 = vmatprep.mubr.msk.f32.mxu0 %vm2185_vm1, %v2184_v41  ;;  %s2190_s12 = smov 64   ;;  %s2191_s17 = smov 8   ;;  %vm1501_vm4 = vcmask 130048  }
   0x6   :  { %1957 = vmatpush3.msra.mxu1 %v69_v15  ;;  %v57_v26 = vsub.s32 0, %v2261_v25  ;;  %v63_v28 = vsub.s32 1, %v2261_v25  ;;  %v73_v39 = vsub.s32 2, %v2261_v25  ;;  %s2192_s22 = smov 16  }
   0x7   :  { %32 = vadd.xlane.f32.xlu0 %v31_v3  ;;  %1958 = vmatprep.subr.mxu1 %v68_v16 }
   0x8   :  { %1959 = vmatpush3.msra.mxu1 %v68_v16  ;;  %v58_v29 = vrot.slane %v2267_v27, %v57_v26  ;;  %v64_v32 = vrot.slane %v2267_v27, %v63_v28  ;;  %v74_v40 = vrot.slane %v2267_v27, %v73_v39 }
   0x9   :  { %1960 = vmatprep.subr.mxu1 %v67_v17 }
   0xa   :  { %1961 = vmatpush3.msra.mxu1 %v67_v17 }
   0xb   :  { %1965 = vmatprep.subr.mxu1 %v2184_v41 }
  0x8c   :  { %v30_v4 = vpop.xlane.xlu0 %29 }
  0x8d   :  { %v35_v5 = vmul.f32 0.03125, %v30_v4 }
  0x8f   :  { %v37_v6 = vsub.f32 %v2234_v0, %v35_v5 }
  0x90   :  { %v33_v7 = vpop.xlane.xlu0 %32 }
  0x91   :  { %v36_v8 = vmul.f32 0.03125, %v33_v7  ;;  %v39_v9 = vmul.f32 %v37_v6, %v37_v6 }
  0x93   :  { %v38_v10 = vsub.f32 %v2239_v1, %v36_v8  ;;  %v41_v11 = vsel %vm27_vm0, %v39_v9, 0.0 }
  0x94   :  { %42 = vadd.xlane.f32.xlu1 %v41_v11 }
  0x95   :  { %v40_v12 = vmul.f32 %v38_v10, %v38_v10 }
  0x97   :  { %v44_v13 = vsel %vm27_vm0, %v40_v12, 0.0 }
  0x98   :  { %45 = vadd.xlane.f32.xlu1 %v44_v13 }
 0x11d   :  { %v43_v18 = vpop.xlane.xlu1 %42 }
 0x11e   :  { %v47_v19 = vmul.f32 0.03125, %v43_v18 }
 0x120   :  { %v49_v20 = vadd.f32 1e-05, %v47_v19 }
 0x121   :  { %v46_v21 = vpop.xlane.xlu1 %45 }
 0x122   :  { %2114 = vrsqrt.f32 %v49_v20  ;;  %v48_v22 = vmul.f32 0.03125, %v46_v21 }
 0x124   :  { %v50_v24 = vadd.f32 1e-05, %v48_v22 }
 0x126   :  { %2116 = vrsqrt.f32 %v50_v24 }
 0x12f   :  { %v2115_v30 = vpop.eup %2114 }
 0x130   :  { %v53_v31 = vmul.f32 %v2115_v30, %v37_v6 }
 0x132   :  { %v59_v33 = vmul.f32 %v58_v29, %v53_v31 }
 0x133   :  { %v2117_v34 = vpop.eup %2116 }
 0x134   :  { %v54_v35 = vmul.f32 %v2117_v34, %v38_v10  ;;  %v65_v36 = vadd.f32 %v64_v32, %v59_v33 }
 0x136   :  { %v60_v37 = vmul.f32 %v58_v29, %v54_v35  ;;  %1962 = vmatprep.mubr.msk.f32.mxu1 %vm27_vm0, %v65_v36 }
 0x138   :  { %v66_v38 = vadd.f32 %v64_v32, %v60_v37 }
 0x13a   :  { %1963 = vmatmul.mubr.msk.f32.vlgmr.msra.gmra.mxu1 %vm27_vm0, %v66_v38 }
 0x13b   :  { %1967 = vmatprep.mubr.msk.f32.mxu1 %vm2185_vm1, %v2184_v41 }
 0x1fa   :  { %v1964_v42 = vpop.f32.mrf.mxu1 }
 0x1fb   :  { %v153_v43 = vadd.f32 %v1964_v42, %v74_v40 }
 0x1fc   :  { %v147_v44 = vpop.f32.mrf.mxu1 }
 0x1fd   :  { %v148_v45 = vadd.f32 %v147_v44, %v74_v40  ;;  %160 = vrot.lane.b32.xlu1 %v153_v43, %s2186_s1 }
 0x1ff   :  { %158 = vrot.lane.b32.xlu0 %v148_v45, %s2186_s1 }
 0x201   :  { %162 = vrot.lane.b32.xlu1 %v148_v45, %s2187_s2 }
 0x203   :  { %166 = vrot.lane.b32.xlu0 %v148_v45, %s2188_s10 }
 0x205   :  { %164 = vrot.lane.b32.xlu1 %v153_v43, %s2187_s2 }
 0x207   :  { %170 = vrot.lane.b32.xlu0 %v148_v45, %s2189_s11 }
 0x209   :  { %168 = vrot.lane.b32.xlu1 %v153_v43, %s2188_s10 }
 0x20d   :  { %247 = vrot.lane.b32.xlu1 %v153_v43, %s2189_s11 }
 0x26f   :  { %v161_v46 = vpop.permute.xlu1 %160 }
 0x270   :  { %399 = vrot.lane.b32.xlu1 %v161_v46, %s2189_s11 }
 0x271   :  { %v159_v47 = vpop.permute.xlu0 %158 }
 0x272   :  { %323 = vrot.lane.b32.xlu0 %v159_v47, %s2189_s11 }
 0x273   :  { %v163_v48 = vpop.permute.xlu1 %162 }
 0x275   :  { %v2282_v49 = vpop.permute.xlu0 %166 }
 0x276   :  { %475 = vrot.lane.b32.xlu0 %v163_v48, %s2189_s11 }
 0x277   :  { %v165_v50 = vpop.permute.xlu1 %164 }
 0x278   :  { %551 = vrot.lane.b32.xlu1 %v165_v50, %s2189_s11 }
 0x279   :  { %v171_v51 = vpop.permute.xlu0 %170 }
 0x27a   :  { %627 = vrot.lane.b32.xlu0 %v2282_v49, %s2189_s11  ;;  %1966 = vmatpush3.xpose.msk.msra.mxu1 %vm172_vm2, %v171_v51 }
 0x27b   :  { %v2286_v52 = vpop.permute.xlu1 %168  ;;  %1970 = vmatprep.subr.mxu1 %v2184_v41 }
 0x27c   :  { %703 = vrot.lane.b32.xlu1 %v2286_v52, %s2189_s11 }
 0x27d   :  { %1968 = vmatmul.mubr.msk.f32.vlgmr.msra.gmra.mxu1 %vm172_vm2, %v148_v45 }
 0x27e   :  { %851 = vrot.lane.b32.xlu0 %v148_v45, %s2190_s12  ;;  %1972 = vmatprep.mubr.msk.f32.mxu1 %vm2185_vm1, %v2184_v41 }
 0x27f   :  { %v248_v53 = vpop.permute.xlu1 %247 }
 0x280   :  { %927 = vrot.lane.b32.xlu1 %v153_v43, %s2190_s12  ;;  %1971 = vmatpush3.xpose.msk.msra.mxu1 %vm172_vm2, %v248_v53 }
 0x281   :  { %1980 = vmatprep.subr.mxu1 %v2184_v41 }
 0x282   :  { %1155 = vrot.lane.b32.xlu0 %v163_v48, %s2190_s12 }
 0x283   :  { %1973 = vmatmul.mubr.msk.f32.vlgmr.msra.gmra.mxu1 %vm172_vm2, %v153_v43 }
 0x284   :  { %1079 = vrot.lane.b32.xlu1 %v161_v46, %s2190_s12  ;;  %1982 = vmatprep.mubr.msk.f32.mxu1 %vm2185_vm1, %v2184_v41 }
 0x288   :  { %1231 = vrot.lane.b32.xlu1 %v165_v50, %s2190_s12 }
 0x28c   :  { %1003 = vrot.lane.b32.xlu1 %v159_v47, %s2190_s12 }
 0x2e2   :  { %v400_v54 = vpop.permute.xlu1 %399 }
 0x2e3   :  { %1981 = vmatpush3.xpose.msk.msra.mxu1 %vm172_vm2, %v400_v54 }
 0x2e4   :  { %v324_v55 = vpop.permute.xlu0 %323  ;;  %1990 = vmatprep.subr.mxu1 %v2184_v41 }
 0x2e5   :  { %1976 = vmatpush3.xpose.msk.msra.mxu0 %vm172_vm2, %v324_v55 }
 0x2e6   :  { %1983 = vmatmul.mubr.msk.f32.vlgmr.msra.gmra.mxu1 %vm172_vm2, %v161_v46  ;;  %1985 = vmatprep.subr.mxu0 %v2184_v41 }
 0x2e7   :  { %1992 = vmatprep.mubr.msk.f32.mxu1 %vm2185_vm1, %v2184_v41 }
 0x2e8   :  { %1978 = vmatmul.mubr.msk.f32.vlgmr.msra.gmra.mxu0 %vm172_vm2, %v159_v47  ;;  %v476_v56 = vpop.permute.xlu0 %475 }
 0x2e9   :  { %1986 = vmatpush3.xpose.msk.msra.mxu0 %vm172_vm2, %v476_v56  ;;  %1987 = vmatprep.mubr.msk.f32.mxu0 %vm2185_vm1, %v2184_v41 }
 0x2ea   :  { %v552_v57 = vpop.permute.xlu1 %551  ;;  %1995 = vmatprep.subr.mxu0 %v2184_v41 }
 0x2eb   :  { %1991 = vmatpush3.xpose.msk.msra.mxu1 %vm172_vm2, %v552_v57 }
 0x2ec   :  { %1988 = vmatmul.mubr.msk.f32.vlgmr.msra.gmra.mxu0 %vm172_vm2, %v163_v48  ;;  %v628_v58 = vpop.permute.xlu0 %627  ;;  %2000 = vmatprep.subr.mxu1 %v2184_v41 }
 0x2ed   :  { %1996 = vmatpush3.xpose.msk.msra.mxu0 %vm172_vm2, %v628_v58  ;;  %1997 = vmatprep.mubr.msk.f32.mxu0 %vm2185_vm1, %v2184_v41 }
 0x2ee   :  { %v704_v59 = vpop.permute.xlu1 %703  ;;  %1993 = vmatmul.mubr.msk.f32.vlgmr.msra.gmra.mxu1 %vm172_vm2, %v165_v50  ;;  %2005 = vmatprep.subr.mxu0 %v2184_v41 }
 0x2ef   :  { %2001 = vmatpush3.xpose.msk.msra.mxu1 %vm172_vm2, %v704_v59  ;;  %2002 = vmatprep.mubr.msk.f32.mxu1 %vm2185_vm1, %v2184_v41 }
 0x2f0   :  { %1998 = vmatmul.mubr.msk.f32.vlgmr.msra.gmra.mxu0 %vm172_vm2, %v2282_v49  ;;  %v852_v60 = vpop.permute.xlu0 %851  ;;  %2010 = vmatprep.subr.mxu1 %v2184_v41 }
 0x2f1   :  { %2006 = vmatpush3.msra.mxu0 %v852_v60  ;;  %2007 = vmatprep.mubr.msk.f32.mxu0 %vm2185_vm1, %v2184_v41 }
 0x2f2   :  { %v928_v61 = vpop.permute.xlu1 %927  ;;  %2003 = vmatmul.mubr.msk.f32.vlgmr.msra.gmra.mxu1 %vm172_vm2, %v2286_v52  ;;  %2015 = vmatprep.subr.mxu0 %v2184_v41 }
 0x2f3   :  { %2011 = vmatpush3.msra.mxu1 %v928_v61  ;;  %2012 = vmatprep.mubr.msk.f32.mxu1 %vm2185_vm1, %v2184_v41 }
 0x2f4   :  { %2020 = vmatprep.subr.mxu1 %v2184_v41  ;;  %v1156_v26 = vpop.permute.xlu0 %1155 }
 0x2f6   :  { %v1080_v24 = vpop.permute.xlu1 %1079 }
 0x2fa   :  { %v1232_v28 = vpop.permute.xlu1 %1231 }
 0x2fe   :  { %v1004_v31 = vpop.permute.xlu1 %1003 }
 0x33d   :  { %v243_v62 = vpop.f32.mrf.mxu1 }
 0x33e   :  { %v779_v63 = vsel %vm172_vm2, %v243_v62, -inf }
 0x33f   :  { %780 = vmax.xlane.f32.xlu0 %v779_v63  ;;  %v1969_v2 = vpop.f32.mrf.mxu1 }
 0x343   :  { %v319_v3 = vpop.f32.mrf.mxu1 }
 0x344   :  { %v782_v4 = vsel %vm172_vm2, %v319_v3, -inf }
 0x345   :  { %783 = vmax.xlane.f32.xlu1 %v782_v4  ;;  %v1974_v5 = vpop.f32.mrf.mxu1 }
 0x3a6   :  { %v471_v6 = vpop.f32.mrf.mxu1 }
 0x3a7   :  { %v788_v7 = vsel %vm172_vm2, %v471_v6, -inf }
 0x3a8   :  { %789 = vmax.xlane.f32.xlu0 %v788_v7  ;;  %v395_v8 = vpop.f32.mrf.mxu0  ;;  %v1984_v9 = vpop.f32.mrf.mxu1 }
 0x3a9   :  { %v785_v11 = vsel %vm172_vm2, %v395_v8, -inf }
 0x3aa   :  { %v1979_v10 = vpop.f32.mrf.mxu0 }
 0x3ac   :  { %786 = vmax.xlane.f32.xlu0 %v785_v11  ;;  %v547_v12 = vpop.f32.mrf.mxu0 }
 0x3ad   :  { %v791_v16 = vsel %vm172_vm2, %v547_v12, -inf }
 0x3ae   :  { %v1989_v13 = vpop.f32.mrf.mxu0  ;;  %v623_v14 = vpop.f32.mrf.mxu1 }
 0x3af   :  { %v794_v15 = vsel %vm172_vm2, %v623_v14, -inf }
 0x3b0   :  { %795 = vmax.xlane.f32.xlu1 %v794_v15  ;;  %v1994_v17 = vpop.f32.mrf.mxu1  ;;  %792 = vmax.xlane.f32.xlu0 %v791_v16  ;;  %v699_v18 = vpop.f32.mrf.mxu0 }
 0x3b1   :  { %v797_v22 = vsel %vm172_vm2, %v699_v18, -inf }
 0x3b2   :  { %v1999_v19 = vpop.f32.mrf.mxu0  ;;  %v775_v20 = vpop.f32.mrf.mxu1 }
 0x3b3   :  { %v800_v21 = vsel %vm172_vm2, %v775_v20, -inf  ;;  %v1510_v19 = vld [vmem:[%s2511_s3 + $0x18] sm:$0xff] }
 0x3b4   :  { %801 = vmax.xlane.f32.xlu1 %v800_v21  ;;  %v2004_v23 = vpop.f32.mrf.mxu1  ;;  %798 = vmax.xlane.f32.xlu0 %v797_v22 }
 0x3c5   :  { %1383 = vrot.lane.b32.xlu1 %v2286_v52, %s2190_s12 }
 0x3c8   :  { %v781_v29 = vpop.xlane.xlu0 %780 }
 0x3c9   :  { %v803_v30 = vsub.f32 %v243_v62, %v781_v29 }
 0x3ca   :  { %1307 = vrot.lane.b32.xlu0 %v2282_v49, %s2190_s12 }
 0x3cb   :  { %v811_v32 = vmul.f32 1.442695, %v803_v30 }
 0x3cd   :  { %2118 = vpow2.f32 %v811_v32 }
 0x3ce   :  { %v784_v33 = vpop.xlane.xlu1 %783 }
 0x3cf   :  { %v804_v34 = vsub.f32 %v319_v3, %v784_v33 }
 0x3d1   :  { %v813_v35 = vmul.f32 1.442695, %v804_v34 }
 0x3d3   :  { %2120 = vpow2.f32 %v813_v35 }
 0x3da   :  { %v2350_v36 = vpop.eup %2118 }
 0x3db   :  { %2008 = vmatmul.mubr.msk.f32.vlgmr.msra.gmra.mxu0 %vm172_vm2, %v2350_v36 }
 0x3dc   :  { %2016 = vmatpush3.msra.mxu0 %v1004_v31  ;;  %2017 = vmatprep.mubr.msk.f32.mxu0 %vm2185_vm1, %v2184_v41  ;;  %v1507_v31 = vld [vmem:[%s2511_s3] sm:$0xff] }
 0x3dd   :  { %2025 = vmatprep.subr.mxu0 %v2184_v41 }
 0x3e0   :  { %v2357_v37 = vpop.eup %2120 }
 0x3e1   :  { %2013 = vmatmul.mubr.msk.f32.vlgmr.msra.gmra.mxu1 %vm172_vm2, %v2357_v37 }
 0x3e2   :  { %2021 = vmatpush3.msra.mxu1 %v1080_v24  ;;  %2022 = vmatprep.mubr.msk.f32.mxu1 %vm2185_vm1, %v2184_v41 }
 0x3e3   :  { %2030 = vmatprep.subr.mxu1 %v2184_v41 }
 0x431   :  { %v790_v38 = vpop.xlane.xlu0 %789 }
 0x432   :  { %v806_v39 = vsub.f32 %v471_v6, %v790_v38 }
 0x434   :  { %v817_v40 = vmul.f32 1.442695, %v806_v39 }
 0x435   :  { %v787_v42 = vpop.xlane.xlu0 %786 }
 0x436   :  { %2122 = vpow2.f32 %v817_v40  ;;  %v805_v43 = vsub.f32 %v395_v8, %v787_v42  ;;  %v830_v8 = vsel %vm172_vm2, %v2357_v37, 0.0 }
 0x438   :  { %v815_v44 = vmul.f32 1.442695, %v805_v43 }
 0x439   :  { %v796_v45 = vpop.xlane.xlu1 %795  ;;  %v793_v46 = vpop.xlane.xlu0 %792 }
 0x43a   :  { %2124 = vpow2.f32 %v815_v44  ;;  %v808_v47 = vsub.f32 %v623_v14, %v796_v45  ;;  %v807_v48 = vsub.f32 %v547_v12, %v793_v46 }
 0x43c   :  { %v821_v49 = vmul.f32 1.442695, %v808_v47  ;;  %v819_v50 = vmul.f32 1.442695, %v807_v48 }
 0x43d   :  { %v802_v51 = vpop.xlane.xlu1 %801  ;;  %v799_v52 = vpop.xlane.xlu0 %798 }
 0x43e   :  { %2126 = vpow2.f32 %v821_v49  ;;  %v810_v53 = vsub.f32 %v775_v20, %v802_v51  ;;  %v809_v54 = vsub.f32 %v699_v18, %v799_v52  ;;  %v1509_v20 = vld [vmem:[%s2511_s3 + $0x10] sm:$0xff] }
 0x43f   :  { %2128 = vpow2.f32 %v819_v50 }
 0x440   :  { %v825_v55 = vmul.f32 1.442695, %v810_v53  ;;  %v823_v56 = vmul.f32 1.442695, %v809_v54 }
 0x441   :  { %v1384_v63 = vpop.permute.xlu1 %1383  ;;  %v1308_v3 = vpop.permute.xlu0 %1307 }
 0x442   :  { %2130 = vpow2.f32 %v825_v55 }
 0x443   :  { %v2123_v57 = vpop.eup %2122  ;;  %2132 = vpow2.f32 %v823_v56 }
 0x444   :  { %2023 = vmatmul.mubr.msk.f32.vlgmr.msra.gmra.mxu1 %vm172_vm2, %v2123_v57  ;;  %v836_v58 = vsel %vm172_vm2, %v2123_v57, 0.0 }
 0x445   :  { %2031 = vmatpush3.msra.mxu1 %v1232_v28  ;;  %837 = vadd.xlane.f32.xlu1 %v836_v58  ;;  %v1508_v28 = vld [vmem:[%s2511_s3 + $0x8] sm:$0xff]  ;;  %s2193_s3 = smov 24  }
 0x446   :  { %2032 = vmatprep.mubr.msk.f32.mxu1 %vm2185_vm1, %v2184_v41  ;;  %2040 = vmatprep.subr.mxu1 %v2184_v41 }
 0x447   :  { %v2125_v59 = vpop.eup %2124 }
 0x448   :  { %2018 = vmatmul.mubr.msk.f32.vlgmr.msra.gmra.mxu0 %vm172_vm2, %v2125_v59  ;;  %v833_v60 = vsel %vm172_vm2, %v2125_v59, 0.0 }
 0x449   :  { %2026 = vmatpush3.msra.mxu0 %v1156_v26  ;;  %834 = vadd.xlane.f32.xlu0 %v833_v60 }
 0x44a   :  { %2027 = vmatprep.mubr.msk.f32.mxu0 %vm2185_vm1, %v2184_v41  ;;  %2035 = vmatprep.subr.mxu0 %v2184_v41 }
 0x44b   :  { %v2127_v61 = vpop.eup %2126 }
 0x44c   :  { %v2129_v62 = vpop.eup %2128  ;;  %2033 = vmatmul.mubr.msk.f32.vlgmr.msra.gmra.mxu1 %vm172_vm2, %v2127_v61  ;;  %v842_v2 = vsel %vm172_vm2, %v2127_v61, 0.0 }
 0x44d   :  { %2028 = vmatmul.mubr.msk.f32.vlgmr.msra.gmra.mxu0 %vm172_vm2, %v2129_v62  ;;  %2041 = vmatpush3.msra.mxu1 %v1384_v63  ;;  %v839_v7 = vsel %vm172_vm2, %v2129_v62, 0.0 }
 0x44e   :  { %2036 = vmatpush3.msra.mxu0 %v1308_v3  ;;  %843 = vadd.xlane.f32.xlu0 %v842_v2 }
 0x44f   :  { %v2131_v4 = vpop.eup %2130  ;;  %2037 = vmatprep.mubr.msk.f32.mxu0 %vm2185_vm1, %v2184_v41  ;;  %2042 = vmatprep.mubr.msk.f32.mxu1 %vm2185_vm1, %v2184_v41  ;;  %v827_v41 = vsel %vm172_vm2, %v2350_v36, 0.0 }
 0x450   :  { %v2133_v5 = vpop.eup %2132  ;;  %2043 = vmatmul.mubr.msk.f32.vlgmr.msra.gmra.mxu1 %vm172_vm2, %v2131_v4  ;;  %v848_v6 = vsel %vm172_vm2, %v2131_v4, 0.0  ;;  %2045 = vmatprep.subr.mxu1 %v1510_v19 }
 0x451   :  { %2038 = vmatmul.mubr.msk.f32.vlgmr.msra.gmra.mxu0 %vm172_vm2, %v2133_v5  ;;  %849 = vadd.xlane.f32.xlu1 %v848_v6  ;;  %v845_v9 = vsel %vm172_vm2, %v2133_v5, 0.0 }
 0x452   :  { %840 = vadd.xlane.f32.xlu0 %v839_v7  ;;  %2046 = vmatpush3.msra.mxu1 %v1510_v19  ;;  %v1513_v7 = vsub.s32 3, %v2261_v25 }
 0x453   :  { %2047 = vmatprep.subr.mxu1 %v1509_v20 }
 0x454   :  { %2048 = vmatpush3.msra.mxu1 %v1509_v20 }
 0x455   :  { %831 = vadd.xlane.f32.xlu1 %v830_v8  ;;  %2049 = vmatprep.subr.mxu1 %v1508_v28  ;;  %v1514_v8 = vrot.slane %v2267_v27, %v1513_v7 }
 0x456   :  { %846 = vadd.xlane.f32.xlu0 %v845_v9  ;;  %2050 = vmatpush3.msra.mxu1 %v1508_v28  ;;  %v1637_v28 = vld [vmem:[%s2512_s4 + $0x8] sm:$0xff] }
 0x457   :  { %2051 = vmatprep.subr.mxu1 %v1507_v31 }
 0x458   :  { %2052 = vmatpush3.msra.mxu1 %v1507_v31 }
 0x45a   :  { %828 = vadd.xlane.f32.xlu0 %v827_v41 }
 0x49b   :  { %v2390_v10 = vpop.f32.mrf.mxu0 }
 0x49d   :  { %v2009_v11 = vpop.f32.mrf.mxu0 }
 0x4a1   :  { %v2392_v12 = vpop.f32.mrf.mxu1 }
 0x4a3   :  { %v2014_v13 = vpop.f32.mrf.mxu1 }
 0x4ce   :  { %v838_v15 = vpop.xlane.xlu1 %837 }
 0x4cf   :  { %2134 = vrcp.f32 %v838_v15 }
 0x4d2   :  { %v835_v14 = vpop.xlane.xlu0 %834 }
 0x4d3   :  { %2136 = vrcp.f32 %v835_v14 }
 0x4d7   :  { %v844_v16 = vpop.xlane.xlu0 %843 }
 0x4d8   :  { %2138 = vrcp.f32 %v844_v16 }
 0x4da   :  { %v850_v22 = vpop.xlane.xlu1 %849 }
 0x4db   :  { %v841_v17 = vpop.xlane.xlu0 %840 }
 0x4dc   :  { %2140 = vrcp.f32 %v841_v17  ;;  %v2135_v21 = vpop.eup %2134 }
 0x4de   :  { %v832_v52 = vpop.xlane.xlu1 %831 }
 0x4df   :  { %v847_v18 = vpop.xlane.xlu0 %846 }
 0x4e0   :  { %2142 = vrcp.f32 %v847_v18  ;;  %v2137_v29 = vpop.eup %2136 }
 0x4e1   :  { %2144 = vrcp.f32 %v850_v22 }
 0x4e3   :  { %v829_v51 = vpop.xlane.xlu0 %828 }
 0x4e4   :  { %2146 = vrcp.f32 %v829_v51  ;;  %v1752_v51 = vld [vmem:[%s2513_s5 + $0x68] sm:$0xff] }
 0x4e5   :  { %v2139_v34 = vpop.eup %2138  ;;  %2148 = vrcp.f32 %v832_v52  ;;  %v1751_v52 = vld [vmem:[%s2513_s5 + $0x60] sm:$0xff] }
 0x4e9   :  { %v2141_v40 = vpop.eup %2140 }
 0x4ed   :  { %v2143_v43 = vpop.eup %2142 }
 0x4ee   :  { %v2145_v49 = vpop.eup %2144 }
 0x4f1   :  { %v2147_v54 = vpop.eup %2146 }
 0x4f2   :  { %v2149_v57 = vpop.eup %2148  ;;  %v1460_v58 = vmul.f32 %v2147_v54, %v2390_v10  ;;  %v1749_v54 = vld [vmem:[%s2513_s5 + $0x50] sm:$0xff] }
 0x4f3   :  { %v1462_v61 = vmul.f32 %v2149_v57, %v2392_v12  ;;  %v1746_v57 = vld [vmem:[%s2513_s5 + $0x38] sm:$0xff] }
 0x504   :  { %v1151_v23 = vpop.f32.mrf.mxu1 }
 0x505   :  { %v1466_v24 = vmul.f32 %v2135_v21, %v1151_v23 }
 0x506   :  { %v2024_v26 = vpop.f32.mrf.mxu1 }
 0x507   :  { %1479 = vrot.lane.b32.xlu1 %v1466_v24, %s2191_s17  ;;  %v1639_v24 = vld [vmem:[%s2512_s4 + $0x18] sm:$0xff]  ;;  %v1638_v26 = vld [vmem:[%s2512_s4 + $0x10] sm:$0xff] }
 0x508   :  { %v1075_v30 = vpop.f32.mrf.mxu0  ;;  %2056 = vmatprep.subr.mxu1 %v1639_v24 }
 0x509   :  { %v1464_v32 = vmul.f32 %v2137_v29, %v1075_v30  ;;  %v1636_v29 = vld [vmem:[%s2512_s4] sm:$0xff] }
 0x50a   :  { %v2019_v33 = vpop.f32.mrf.mxu0 }
 0x50b   :  { %1477 = vrot.lane.b32.xlu0 %v1464_v32, %s2191_s17 }
 0x50c   :  { %v1303_v35 = vpop.f32.mrf.mxu1 }
 0x50d   :  { %v1227_v36 = vpop.f32.mrf.mxu0  ;;  %v1470_v37 = vmul.f32 %v2139_v34, %v1303_v35 }
 0x50e   :  { %v2034_v38 = vpop.f32.mrf.mxu1  ;;  %v1468_v44 = vmul.f32 %v2141_v40, %v1227_v36  ;;  %v1626_v36 = vsub.s32 4, %v2261_v25 }
 0x50f   :  { %v2029_v39 = vpop.f32.mrf.mxu0  ;;  %1487 = vrot.lane.b32.xlu1 %v1470_v37, %s2192_s22  ;;  %v1632_v37 = vsub.s32 5, %v2261_v25 }
 0x510   :  { %v1455_v42 = vpop.f32.mrf.mxu1  ;;  %v1627_v38 = vrot.slane %v2267_v27, %v1626_v36 }
 0x511   :  { %v1379_v45 = vpop.f32.mrf.mxu0  ;;  %v1474_v50 = vmul.f32 %v2145_v49, %v1455_v42  ;;  %v1633_v42 = vrot.slane %v2267_v27, %v1632_v37  ;;  %v1754_v49 = vld [vmem:[%s2513_s5 + $0x78] sm:$0xff] }
 0x512   :  { %v1472_v46 = vmul.f32 %v2143_v43, %v1379_v45  ;;  %v2044_v47 = vpop.f32.mrf.mxu1  ;;  %2067 = vmatprep.subr.mxu0 %v1754_v49 }
 0x513   :  { %v2039_v48 = vpop.f32.mrf.mxu0  ;;  %1485 = vrot.lane.b32.xlu1 %v1468_v44, %s2192_s22  ;;  %2068 = vmatpush3.msra.mxu0 %v1754_v49 }
 0x514   :  { %1493 = vrot.lane.b32.xlu0 %v1472_v46, %s2193_s3 }
 0x517   :  { %1495 = vrot.lane.b32.xlu1 %v1474_v50, %s2193_s3  ;;  %v1753_v50 = vld [vmem:[%s2513_s5 + $0x70] sm:$0xff] }
 0x518   :  { %2069 = vmatprep.subr.mxu0 %v1753_v50 }
 0x519   :  { %2070 = vmatpush3.msra.mxu0 %v1753_v50 }
 0x51a   :  { %2071 = vmatprep.subr.mxu0 %v1752_v51 }
 0x51b   :  { %2072 = vmatpush3.msra.mxu0 %v1752_v51 }
 0x51c   :  { %2073 = vmatprep.subr.mxu0 %v1751_v52 }
 0x51d   :  { %2074 = vmatpush3.msra.mxu0 %v1751_v52 }
 0x579   :  { %v1480_v53 = vpop.permute.xlu1 %1479 }
 0x57a   :  { %v1500_v3 = vsel %vm172_vm2, %v1462_v61, %v1480_v53  ;;  %v1750_v53 = vld [vmem:[%s2513_s5 + $0x58] sm:$0xff] }
 0x57b   :  { %2075 = vmatprep.subr.mxu0 %v1750_v53  ;;  %v1742_v61 = vld [vmem:[%s2513_s5 + $0x18] sm:$0xff] }
 0x57c   :  { %2076 = vmatpush3.msra.mxu0 %v1750_v53 }
 0x57d   :  { %v1478_v56 = vpop.permute.xlu0 %1477  ;;  %2077 = vmatprep.subr.mxu0 %v1749_v54 }
 0x57e   :  { %v1499_v59 = vsel %vm172_vm2, %v1460_v58, %v1478_v56  ;;  %2078 = vmatpush3.msra.mxu0 %v1749_v54  ;;  %v1747_v56 = vld [vmem:[%s2513_s5 + $0x40] sm:$0xff]  ;;  %v1745_v58 = vld [vmem:[%s2513_s5 + $0x30] sm:$0xff] }
 0x581   :  { %v1488_v55 = vpop.permute.xlu1 %1487 }
 0x582   :  { %v1503_v4 = vsel %vm1501_vm4, %v1500_v3, %v1488_v55  ;;  %v1748_v55 = vld [vmem:[%s2513_s5 + $0x48] sm:$0xff]  ;;  %v1642_v3 = vsub.s32 6, %v2261_v25 }
 0x583   :  { %2079 = vmatprep.subr.mxu0 %v1748_v55 }
 0x584   :  { %2080 = vmatpush3.msra.mxu0 %v1748_v55 }
 0x585   :  { %v1486_v60 = vpop.permute.xlu1 %1485  ;;  %2081 = vmatprep.subr.mxu0 %v1747_v56 }
 0x586   :  { %v1502_v62 = vsel %vm1501_vm4, %v1499_v59, %v1486_v60  ;;  %v1494_v63 = vpop.permute.xlu0 %1493  ;;  %2082 = vmatpush3.msra.mxu0 %v1747_v56  ;;  %v1744_v59 = vld [vmem:[%s2513_s5 + $0x28] sm:$0xff]  ;;  %v1743_v60 = vld [vmem:[%s2513_s5 + $0x20] sm:$0xff] }
 0x587   :  { %v1505_v2 = vsel %vm1504_vm3, %v1502_v62, %v1494_v63  ;;  %2083 = vmatprep.subr.mxu0 %v1746_v57  ;;  %v1741_v62 = vld [vmem:[%s2513_s5 + $0x10] sm:$0xff]  ;;  %v1740_v63 = vld [vmem:[%s2513_s5 + $0x8] sm:$0xff] }
 0x588   :  { %2053 = vmatprep.mubr.msk.f32.mxu1 %vm27_vm0, %v1505_v2  ;;  %2084 = vmatpush3.msra.mxu0 %v1746_v57  ;;  %v1739_v2 = vld [vmem:[%s2513_s5] sm:$0xff]  ;;  %s2194_s5 = smov [#allocation2]  }
 0x589   :  { %v1496_v5 = vpop.permute.xlu1 %1495  ;;  %2085 = vmatprep.subr.mxu0 %v1745_v58  ;;  %s1843_s9 = sshll.u32 %s2194_s5, 4  ;;  %s1844_s9 = int_to_ptr.vmem [resolvable:$true] %s1843_s9 }
 0x58a   :  { %v1506_v6 = vsel %vm1504_vm3, %v1503_v4, %v1496_v5  ;;  %2086 = vmatpush3.msra.mxu0 %v1745_v58  ;;  %v1643_v4 = vrot.slane %v2267_v27, %v1642_v3  ;;  %s2162_s1 = scalar_lea.vmem %s1844_s9, 256  ;;  %p2167_p1 = scmp.lt.s32.totalorder %s1844_s9, %s1844_s9 }
 0x58b   :  { %2054 = vmatmul.mubr.msk.f32.vlgmr.msra.gmra.mxu1 %vm27_vm0, %v1506_v6  ;;  %2087 = vmatprep.subr.mxu0 %v1744_v59  ;;  %p2163_p0 = scmp.ne.s32.totalorder %s1844_s9, %s2162_s1  ;;  %p2168_p2 = scmp.lt.s32.totalorder %s2162_s1, %s2162_s1 }
 0x58c   :  { %2057 = vmatpush3.msra.mxu1 %v1639_v24  ;;  %2088 = vmatpush3.msra.mxu0 %v1744_v59 }
 0x58d   :  { %2058 = vmatprep.subr.mxu1 %v1638_v26  ;;  %2089 = vmatprep.subr.mxu0 %v1743_v60  ;;  %p2169_p3 = por %p2168_p2, %p2167_p1 }
 0x58e   :  { %2059 = vmatpush3.msra.mxu1 %v1638_v26  ;;  %2090 = vmatpush3.msra.mxu0 %v1743_v60 }
 0x58f   :  { %2060 = vmatprep.subr.mxu1 %v1637_v28  ;;  %2091 = vmatprep.subr.mxu0 %v1742_v61  ;;  %p2170_p4 = pnand %p2169_p3, %p2163_p0 }
 0x590   :  { %2061 = vmatpush3.msra.mxu1 %v1637_v28  ;;  %2092 = vmatpush3.msra.mxu0 %v1742_v61 }
 0x591   :  { %2062 = vmatprep.subr.mxu1 %v1636_v29  ;;  %2093 = vmatprep.subr.mxu0 %v1741_v62 }
 0x592   :  { %2063 = vmatpush3.msra.mxu1 %v1636_v29  ;;  %2094 = vmatpush3.msra.mxu0 %v1741_v62 }
 0x593   :  { %2095 = vmatprep.subr.mxu0 %v1740_v63 }
 0x594   :  { %2096 = vmatpush3.msra.mxu0 %v1740_v63 }
 0x595   :  { %2097 = vmatprep.subr.mxu0 %v1739_v2 }
 0x596   :  { %2098 = vmatpush3.msra.mxu0 %v1739_v2 }
 0x64b   :  { %v2055_v9 = vpop.f32.mrf.mxu1 }
 0x64c   :  { %v1593_v41 = vadd.f32 %v2055_v9, %v1514_v8 }
 0x64d   :  { %v1587_v10 = vpop.f32.mrf.mxu1 }
 0x64e   :  { %v2417_v11 = vadd.f32 %v1593_v41, %v2239_v1  ;;  %v1588_v12 = vadd.f32 %v1587_v10, %v1514_v8 }
 0x650   :  { %v2420_v13 = vadd.f32 %v1588_v12, %v2234_v0  ;;  %v1601_v14 = vsel %vm27_vm0, %v2417_v11, 0.0 }
 0x651   :  { %1602 = vadd.xlane.f32.xlu1 %v1601_v14 }
 0x652   :  { %v1598_v15 = vsel %vm27_vm0, %v2420_v13, 0.0 }
 0x653   :  { %1599 = vadd.xlane.f32.xlu0 %v1598_v15 }
 0x6da   :  { %v1603_v16 = vpop.xlane.xlu1 %1602 }
 0x6db   :  { %v1605_v17 = vmul.f32 0.03125, %v1603_v16 }
 0x6dc   :  { %v1600_v18 = vpop.xlane.xlu0 %1599 }
 0x6dd   :  { %v1604_v19 = vmul.f32 0.03125, %v1600_v18  ;;  %v1607_v20 = vsub.f32 %v2417_v11, %v1605_v17 }
 0x6df   :  { %v1606_v1 = vsub.f32 %v2420_v13, %v1604_v19  ;;  %v1609_v22 = vmul.f32 %v1607_v20, %v1607_v20 }
 0x6e1   :  { %v1608_v21 = vmul.f32 %v1606_v1, %v1606_v1  ;;  %v1613_v23 = vsel %vm27_vm0, %v1609_v22, 0.0 }
 0x6e3   :  { %v1610_v0 = vsel %vm27_vm0, %v1608_v21, 0.0 }
 0x6e4   :  { %1611 = vadd.xlane.f32.xlu0 %v1610_v0 }
 0x6e8   :  { %1614 = vadd.xlane.f32.xlu0 %v1613_v23 }
 0x76d   :  { %v1612_v30 = vpop.xlane.xlu0 %1611 }
 0x76e   :  { %v1616_v31 = vmul.f32 0.03125, %v1612_v30 }
 0x770   :  { %v1618_v32 = vadd.f32 1e-05, %v1616_v31 }
 0x771   :  { %v1615_v33 = vpop.xlane.xlu0 %1614 }
 0x772   :  { %2150 = vrsqrt.f32 %v1618_v32  ;;  %v1617_v34 = vmul.f32 0.03125, %v1615_v33 }
 0x774   :  { %v1619_v35 = vadd.f32 1e-05, %v1617_v34 }
 0x776   :  { %2152 = vrsqrt.f32 %v1619_v35 }
 0x77f   :  { %v2151_v39 = vpop.eup %2150 }
 0x780   :  { %v1622_v40 = vmul.f32 %v2151_v39, %v1606_v1 }
 0x782   :  { %v1628_v43 = vmul.f32 %v1627_v38, %v1622_v40 }
 0x783   :  { %v2153_v44 = vpop.eup %2152 }
 0x784   :  { %v1623_v45 = vmul.f32 %v2153_v44, %v1607_v20  ;;  %v1634_v46 = vadd.f32 %v1633_v42, %v1628_v43  ;;  %v1757_v20 = vsub.s32 7, %v2261_v25 }
 0x786   :  { %v1629_v47 = vmul.f32 %v1627_v38, %v1623_v45  ;;  %2064 = vmatprep.mubr.msk.f32.mxu1 %vm27_vm0, %v1634_v46  ;;  %v1758_v1 = vrot.slane %v2267_v27, %v1757_v20 }
 0x788   :  { %v1635_v48 = vadd.f32 %v1633_v42, %v1629_v47 }
 0x78a   :  { %2065 = vmatmul.mubr.msk.f32.vlgmr.msra.gmra.mxu1 %vm27_vm0, %v1635_v48 }
 0x84a   :  { %v2066_v5 = vpop.f32.mrf.mxu1 }
 0x84b   :  { %v1722_v6 = vadd.f32 %v2066_v5, %v1643_v4 }
 0x84c   :  { %v1716_v7 = vpop.f32.mrf.mxu1 }
 0x84d   :  { %v1885_v8 = vmul.f32 -1.442695, %v1722_v6  ;;  %v1717_v9 = vadd.f32 %v1716_v7, %v1643_v4 }
 0x84f   :  { %2154 = vpow2.f32 %v1885_v8  ;;  %v1884_v41 = vmul.f32 -1.442695, %v1717_v9 }
 0x851   :  { %2156 = vpow2.f32 %v1884_v41 }
 0x85c   :  { %v2155_v10 = vpop.eup %2154 }
 0x85d   :  { %v1732_v12 = vadd.f32 1.0, %v2155_v10 }
 0x85e   :  { %v2157_v14 = vpop.eup %2156 }
 0x85f   :  { %v1731_v15 = vadd.f32 1.0, %v2157_v14  ;;  %2158 = vrcp.f32 %v1732_v12 }
 0x861   :  { %2160 = vrcp.f32 %v1731_v15 }
 0x86c   :  { %v2159_v16 = vpop.eup %2158 }
 0x86d   :  { %v1738_v19 = vmul.f32 %v2159_v16, %v1722_v6 }
 0x86e   :  { %v2161_v17 = vpop.eup %2160 }
 0x86f   :  { %v1737_v18 = vmul.f32 %v2161_v17, %v1717_v9 }
 0x871   :  { %2099 = vmatprep.mubr.f32.mxu0 %v1737_v18 }
 0x872   :  { %2100 = vmatmul.mubr.f32.vlgmr.msra.gmra.mxu0 %v1738_v19 }
 0x932   :  { %v2101_v21 = vpop.f32.mrf.mxu0 }
 0x933   :  { %v1831_v0 = vadd.f32 %v2101_v21, %v1758_v1 }
 0x934   :  { %v1825_v22 = vpop.f32.mrf.mxu0 }
 0x935   :  { %v1835_v23 = vadd.f32 %v1831_v0, %v2417_v11  ;;  %v1826_v24 = vadd.f32 %v1825_v22, %v1758_v1 }
 0x937   :  { %1837 = vst.msk [vmem:[#allocation2 + $0x8] sm:$0xff] %vm27_vm0, %v1835_v23  ;;  %v1834_v26 = vadd.f32 %v1826_v24, %v2420_v13 }
 0x939   :  { %1836 = vst.msk [vmem:[#allocation2] sm:$0xff] %vm27_vm0, %v1834_v26 }
 0x93a   :  { %2173 = shalt.err (!%p2170_p4)
}
 0x93b   :  { %s2195_s2 = smov 128  }
 0x93c   :  { %1849 = dma.vmem_to_hbm [thread:$0]  %s1844_s9, 256, %s2514_s6, [#allocation3], %s2195_s2, %s2195_s2, %s2191_s17  }
 0x93d   :  { %2182 = dma.done.wait [#allocation3], 256  }
 0x93e   :  { %2183 = vsyncadd [#allocation3], 4294967040 }
 0x93f   :  { %1853 = vsyncpa [#allocation3], 1 }

</bundles_post_ra>
